<compile_context>
chip_gen: v7x
topology: tpu7x:2x2x1
jax: 0.10.0
libtpu: 0.0.40
codegen_flags: <defaults>
</compile_context>

<pallas_src>
import numpy as np
import jax
import jax.numpy as jnp
from jax.experimental import pallas as pl
from jax.experimental.pallas import tpu as pltpu

SEQ_LEN = 5
FC1_OUT = 32   # nn.Linear(hidden, 32)
FC2_OUT = 2    # nn.Linear(32, 2)


def stock_model_kernel(
    x_ref,       # (T*B, D)  rows ordered t-major: row = t*B + b
    wi_ref,      # (D, 3H)   packed input weights  [r | z | n]
    wh_ref,      # (H, 3H)   packed hidden weights [r | z | n]
    bias_ref,    # (8, H)    rows: br, bz, b_in, b_hn, gamma, beta, 0, 0
    head_ref,    # (72, 32)  rows: w1 (H), w2_pad (32), b1 (1), b2_pad (1), zero pad
    out_ref,     # (B, 2)
):
    H = wh_ref.shape[0]
    B = out_ref.shape[0]
    T = x_ref.shape[0] // B

    x2d = x_ref[...].astype(jnp.float32)        # (T*B, D)
    W_i = wi_ref[...]                           # (D, 3H)
    W_h = wh_ref[...]                           # (H, 3H)
    bias = bias_ref[...]                        # (8, H)
    head = head_ref[...]                        # (72, 32)

    br = bias[0:1, :]
    bz = bias[1:2, :]
    b_in = bias[2:3, :]
    b_hn = bias[3:4, :]
    gamma = bias[4:5, :]
    beta = bias[5:6, :]

    w1 = head[0:H, :]                           # (H, 32)
    w2 = head[H:H + FC1_OUT, :]                 # (32, 32)  cols >= 2 are zero
    b1 = head[H + FC1_OUT:H + FC1_OUT + 1, :]   # (1, 32)
    b2 = head[H + FC1_OUT + 1:H + FC1_OUT + 2, :]  # (1, 32) cols >= 2 are zero

    # ---- hoisted input projection: all timesteps at once (one MXU op) ----
    gi_all = jnp.dot(x2d, W_i, preferred_element_type=jnp.float32)  # (T*B, 3H)

    # ---- GRU recurrence (PyTorch gate order r, z, n); only h@W_h is serial ----
    h = jnp.zeros((B, H), jnp.float32)
    for t in range(T):  # static unroll, T = SEQ_LEN = 5
        gi = gi_all[t * B:(t + 1) * B, :]                            # (B, 3H)
        gh = jnp.dot(h, W_h, preferred_element_type=jnp.float32)    # (B, 3H)
        r = jax.nn.sigmoid(gi[:, 0:H] + gh[:, 0:H] + br)
        z = jax.nn.sigmoid(gi[:, H:2 * H] + gh[:, H:2 * H] + bz)
        n = jnp.tanh(gi[:, 2 * H:3 * H] + b_in + r * (gh[:, 2 * H:3 * H] + b_hn))
        h = (1.0 - z) * n + z * h                                    # (B, H)

    # ---- LayerNorm over hidden dim (eps = 1e-5, PyTorch default) ----
    mean = jnp.mean(h, axis=-1, keepdims=True)
    var = jnp.mean((h - mean) ** 2, axis=-1, keepdims=True)
    h_ln = (h - mean) * jax.lax.rsqrt(var + 1e-5) * gamma + beta

    # ---- fc1 + exact GELU (erf-based, matches nn.GELU() default) ----
    y1 = jnp.dot(h_ln, w1, preferred_element_type=jnp.float32) + b1
    inv_sqrt2 = jnp.float32(0.7071067811865476)
    g = 0.5 * y1 * (1.0 + jax.lax.erf(y1 * inv_sqrt2))

    # Dropout is identity at inference time (module dropout is train-only).

    # ---- fc2 (lane-padded to 32, slice the 2 real columns for the store) ----
    out32 = jnp.dot(g, w2, preferred_element_type=jnp.float32) + b2  # (B, 32)
    out_ref[...] = out32[:, 0:FC2_OUT]


def init_params(key, input_size, hidden_size=32):
    """Deterministic synthetic parameters, PyTorch-style uniform init."""
    ks = jax.random.split(key, 8)
    s = 1.0 / np.sqrt(hidden_size)
    p = {}
    p["w_ih"] = jax.random.uniform(ks[0], (3 * hidden_size, input_size),
                                   jnp.float32, -s, s)
    p["w_hh"] = jax.random.uniform(ks[1], (3 * hidden_size, hidden_size),
                                   jnp.float32, -s, s)
    p["b_ih"] = jax.random.uniform(ks[2], (3 * hidden_size,), jnp.float32, -s, s)
    p["b_hh"] = jax.random.uniform(ks[3], (3 * hidden_size,), jnp.float32, -s, s)
    p["gamma"] = jnp.ones((hidden_size,), jnp.float32)
    p["beta"] = jnp.zeros((hidden_size,), jnp.float32)
    s1 = 1.0 / np.sqrt(hidden_size)
    p["w1"] = jax.random.uniform(ks[4], (FC1_OUT, hidden_size), jnp.float32, -s1, s1)
    p["b1"] = jax.random.uniform(ks[5], (FC1_OUT,), jnp.float32, -s1, s1)
    s2 = 1.0 / np.sqrt(FC1_OUT)
    p["w2"] = jax.random.uniform(ks[6], (FC2_OUT, FC1_OUT), jnp.float32, -s2, s2)
    p["b2"] = jax.random.uniform(ks[7], (FC2_OUT,), jnp.float32, -s2, s2)
    return p


def pack_params(params, hidden_size=32):
    """One-time host-side packing: fused gate matrices + bias/head slabs.

    Returns exactly the 4 constant operands the kernel takes (besides x).
    """
    H = hidden_size
    w_ih, w_hh = params["w_ih"], params["w_hh"]      # (3H, D), (3H, H), rows [r|z|n]
    b_ih, b_hh = params["b_ih"], params["b_hh"]

    W_i = jnp.asarray(w_ih).T                        # (D, 3H), cols [r|z|n]
    W_h = jnp.asarray(w_hh).T                        # (H, 3H), cols [r|z|n]

    br = b_ih[0 * H:1 * H] + b_hh[0 * H:1 * H]
    bz = b_ih[1 * H:2 * H] + b_hh[1 * H:2 * H]
    b_in = b_ih[2 * H:3 * H]
    b_hn = b_hh[2 * H:3 * H]
    bias_rows = jnp.stack(
        [br, bz, b_in, b_hn, params["gamma"], params["beta"]], axis=0)   # (6, H)
    bias_slab = jnp.concatenate(
        [bias_rows, jnp.zeros((2, H), jnp.float32)], axis=0)             # (8, H)

    w1t = jnp.asarray(params["w1"]).T                                    # (H, 32)
    w2t = jnp.asarray(params["w2"]).T                                    # (32, 2)
    w2_pad = jnp.pad(w2t, ((0, 0), (0, FC1_OUT - FC2_OUT)))              # (32, 32)
    b1_row = params["b1"][None, :]                                       # (1, 32)
    b2_row = jnp.pad(params["b2"], (0, FC1_OUT - FC2_OUT))[None, :]      # (1, 32)
    n_rows = H + FC1_OUT + 2
    pad_rows = (-n_rows) % 8
    head_slab = jnp.concatenate(
        [w1t, w2_pad, b1_row, b2_row,
         jnp.zeros((pad_rows, FC1_OUT), jnp.float32)], axis=0)           # (72, 32)

    return W_i, W_h, bias_slab, head_slab


def stock_model_forward(x, packed, drop_features=None, mask_scale=0.3):
    """x: (B, SEQ_LEN, input_size) float32 -> (B, 2) float32."""
    drop_features = drop_features or []
    if drop_features:  # glue (feature masking), plain JAX
        for idx in drop_features:
            x = x.at[:, :, idx].multiply(mask_scale)

    W_i, W_h, bias_slab, head_slab = packed
    B, T, D = x.shape
    # t-major flattening so the hoisted projection's rows for step t are contiguous.
    x2d = jnp.transpose(x, (1, 0, 2)).reshape(T * B, D)

    vmem_spec = pl.BlockSpec(memory_space=pltpu.MemorySpace.VMEM)
    # TODO(synk): for large B add a batch grid (BlockSpec over B, weights at (0,0),
    # dimension_semantics=("parallel",)) to double-buffer x and use both v7x cores.
    return pl.pallas_call(
        stock_model_kernel,
        out_shape=jax.ShapeDtypeStruct((B, FC2_OUT), jnp.float32),
        in_specs=[vmem_spec] * 5,
        out_specs=vmem_spec,
    )(x2d, W_i, W_h, bias_slab, head_slab)


def reference_forward(x, params, hidden_size=32):
    """Pure-JAX reference (mirrors PyTorch StockModel.forward in eval mode)."""
    H = hidden_size
    w_ih, w_hh, b_ih, b_hh = (params["w_ih"], params["w_hh"],
                              params["b_ih"], params["b_hh"])
    B, T, _ = x.shape
    h = jnp.zeros((B, H), jnp.float32)
    for t in range(T):
        xt = x[:, t, :]
        gi = xt @ w_ih.T + b_ih
        gh = h @ w_hh.T + b_hh
        r = jax.nn.sigmoid(gi[:, :H] + gh[:, :H])
        z = jax.nn.sigmoid(gi[:, H:2 * H] + gh[:, H:2 * H])
        n = jnp.tanh(gi[:, 2 * H:] + r * gh[:, 2 * H:])
        h = (1.0 - z) * n + z * h
    mean = jnp.mean(h, -1, keepdims=True)
    var = jnp.mean((h - mean) ** 2, -1, keepdims=True)
    h = (h - mean) / jnp.sqrt(var + 1e-5) * params["gamma"] + params["beta"]
    y = h @ params["w1"].T + params["b1"]
    y = 0.5 * y * (1.0 + jax.lax.erf(y / jnp.sqrt(2.0)))
    return y @ params["w2"].T + params["b2"]


if __name__ == "__main__":
    key = jax.random.PRNGKey(0)
    k_x, k_p = jax.random.split(key)

    batch, input_size, hidden_size = 4, 8, 32
    x = jax.random.normal(k_x, (batch, SEQ_LEN, input_size), jnp.float32)
    params = init_params(k_p, input_size, hidden_size)
    packed = pack_params(params, hidden_size)   # one-time weight packing

    out = stock_model_forward(x, packed)
    out = jax.block_until_ready(out)

    ref = reference_forward(x, params, hidden_size=hidden_size)
    assert out.shape == (batch, FC2_OUT)
    assert np.allclose(np.asarray(out), np.asarray(ref), rtol=1e-3, atol=1e-3)

    print("KERNEL_OK")
</pallas_src>

<mosaic_0001>
module attributes {stable_mosaic.version = 11 : i64} {
  func.func @stock_model_kernel(%arg0: memref<20x8xf32, #tpu.memory_space<vmem>>, %arg1: memref<8x96xf32, #tpu.memory_space<vmem>>, %arg2: memref<32x96xf32, #tpu.memory_space<vmem>>, %arg3: memref<8x32xf32, #tpu.memory_space<vmem>>, %arg4: memref<72x32xf32, #tpu.memory_space<vmem>>, %arg5: memref<4x2xf32, #tpu.memory_space<vmem>>) attributes {dimension_semantics = [], scalar_prefetch = 0 : i64, scratch_operands = 0 : i64, tpu.core_type = #tpu.core_type<tc>} {
    %c0 = arith.constant 0 : index
    %c0_0 = arith.constant 0 : index
    %0 = vector.load %arg0[%c0, %c0_0] : memref<20x8xf32, #tpu.memory_space<vmem>>, vector<20x8xf32>
    %c0_1 = arith.constant 0 : index
    %c0_2 = arith.constant 0 : index
    %1 = vector.load %arg1[%c0_1, %c0_2] : memref<8x96xf32, #tpu.memory_space<vmem>>, vector<8x96xf32>
    %c0_3 = arith.constant 0 : index
    %c0_4 = arith.constant 0 : index
    %2 = vector.load %arg2[%c0_3, %c0_4] : memref<32x96xf32, #tpu.memory_space<vmem>>, vector<32x96xf32>
    %c0_5 = arith.constant 0 : index
    %c0_6 = arith.constant 0 : index
    %3 = vector.load %arg3[%c0_5, %c0_6] : memref<8x32xf32, #tpu.memory_space<vmem>>, vector<8x32xf32>
    %c0_7 = arith.constant 0 : index
    %c0_8 = arith.constant 0 : index
    %4 = vector.load %arg4[%c0_7, %c0_8] : memref<72x32xf32, #tpu.memory_space<vmem>>, vector<72x32xf32>
    %5 = vector.extract_strided_slice %3 {offsets = [0, 0], sizes = [1, 32], strides = [1, 1]} : vector<8x32xf32> to vector<1x32xf32>
    %6 = vector.extract_strided_slice %3 {offsets = [1, 0], sizes = [1, 32], strides = [1, 1]} : vector<8x32xf32> to vector<1x32xf32>
    %7 = vector.extract_strided_slice %3 {offsets = [2, 0], sizes = [1, 32], strides = [1, 1]} : vector<8x32xf32> to vector<1x32xf32>
    %8 = vector.extract_strided_slice %3 {offsets = [3, 0], sizes = [1, 32], strides = [1, 1]} : vector<8x32xf32> to vector<1x32xf32>
    %9 = vector.extract_strided_slice %3 {offsets = [4, 0], sizes = [1, 32], strides = [1, 1]} : vector<8x32xf32> to vector<1x32xf32>
    %10 = vector.extract_strided_slice %3 {offsets = [5, 0], sizes = [1, 32], strides = [1, 1]} : vector<8x32xf32> to vector<1x32xf32>
    %11 = vector.extract_strided_slice %4 {offsets = [0, 0], sizes = [32, 32], strides = [1, 1]} : vector<72x32xf32> to vector<32x32xf32>
    %12 = vector.extract_strided_slice %4 {offsets = [32, 0], sizes = [32, 32], strides = [1, 1]} : vector<72x32xf32> to vector<32x32xf32>
    %13 = vector.extract_strided_slice %4 {offsets = [64, 0], sizes = [1, 32], strides = [1, 1]} : vector<72x32xf32> to vector<1x32xf32>
    %14 = vector.extract_strided_slice %4 {offsets = [65, 0], sizes = [1, 32], strides = [1, 1]} : vector<72x32xf32> to vector<1x32xf32>
    %cst = arith.constant dense<0.000000e+00> : vector<20x96xf32>
    %15 = tpu.matmul %0, %1, %cst {dimension_numbers = #tpu.dot_dimension_numbers<[1], [0], [0], [1], [0, 0, 1, 1], [], []>} : vector<20x8xf32>, vector<8x96xf32>, vector<20x96xf32> -> vector<20x96xf32>
    %cst_9 = arith.constant 0.000000e+00 : f32
    %16 = vector.broadcast %cst_9 : f32 to vector<4x32xf32>
    %17 = vector.extract_strided_slice %15 {offsets = [0, 0], sizes = [4, 96], strides = [1, 1]} : vector<20x96xf32> to vector<4x96xf32>
    %cst_10 = arith.constant dense<0.000000e+00> : vector<4x96xf32>
    %18 = tpu.matmul %16, %2, %cst_10 {dimension_numbers = #tpu.dot_dimension_numbers<[1], [0], [0], [1], [0, 0, 1, 1], [], []>} : vector<4x32xf32>, vector<32x96xf32>, vector<4x96xf32> -> vector<4x96xf32>
    %19 = vector.extract_strided_slice %17 {offsets = [0, 0], sizes = [4, 32], strides = [1, 1]} : vector<4x96xf32> to vector<4x32xf32>
    %20 = vector.extract_strided_slice %18 {offsets = [0, 0], sizes = [4, 32], strides = [1, 1]} : vector<4x96xf32> to vector<4x32xf32>
    %21 = arith.addf %19, %20 : vector<4x32xf32>
    %22 = vector.broadcast %5 : vector<1x32xf32> to vector<4x32xf32>
    %23 = arith.addf %21, %22 : vector<4x32xf32>
    %24 = arith.negf %23 : vector<4x32xf32>
    %25 = math.exp %24 : vector<4x32xf32>
    %cst_11 = arith.constant 1.000000e+00 : f32
    %26 = vector.broadcast %cst_11 : f32 to vector<4x32xf32>
    %27 = arith.addf %26, %25 : vector<4x32xf32>
    %28 = arith.divf %26, %27 : vector<4x32xf32>
    %29 = vector.extract_strided_slice %17 {offsets = [0, 32], sizes = [4, 32], strides = [1, 1]} : vector<4x96xf32> to vector<4x32xf32>
    %30 = vector.extract_strided_slice %18 {offsets = [0, 32], sizes = [4, 32], strides = [1, 1]} : vector<4x96xf32> to vector<4x32xf32>
    %31 = arith.addf %29, %30 : vector<4x32xf32>
    %32 = vector.broadcast %6 : vector<1x32xf32> to vector<4x32xf32>
    %33 = arith.addf %31, %32 : vector<4x32xf32>
    %34 = arith.negf %33 : vector<4x32xf32>
    %35 = math.exp %34 : vector<4x32xf32>
    %cst_12 = arith.constant 1.000000e+00 : f32
    %36 = vector.broadcast %cst_12 : f32 to vector<4x32xf32>
    %37 = arith.addf %36, %35 : vector<4x32xf32>
    %38 = arith.divf %36, %37 : vector<4x32xf32>
    %39 = vector.extract_strided_slice %17 {offsets = [0, 64], sizes = [4, 32], strides = [1, 1]} : vector<4x96xf32> to vector<4x32xf32>
    %40 = vector.broadcast %7 : vector<1x32xf32> to vector<4x32xf32>
    %41 = arith.addf %39, %40 : vector<4x32xf32>
    %42 = vector.extract_strided_slice %18 {offsets = [0, 64], sizes = [4, 32], strides = [1, 1]} : vector<4x96xf32> to vector<4x32xf32>
    %43 = vector.broadcast %8 : vector<1x32xf32> to vector<4x32xf32>
    %44 = arith.addf %42, %43 : vector<4x32xf32>
    %45 = arith.mulf %28, %44 : vector<4x32xf32>
    %46 = arith.addf %41, %45 : vector<4x32xf32>
    %47 = math.tanh %46 : vector<4x32xf32>
    %cst_13 = arith.constant 1.000000e+00 : f32
    %48 = vector.broadcast %cst_13 : f32 to vector<4x32xf32>
    %49 = arith.subf %48, %38 : vector<4x32xf32>
    %50 = arith.mulf %49, %47 : vector<4x32xf32>
    %51 = arith.mulf %38, %16 : vector<4x32xf32>
    %52 = arith.addf %50, %51 : vector<4x32xf32>
    %53 = vector.extract_strided_slice %15 {offsets = [4, 0], sizes = [4, 96], strides = [1, 1]} : vector<20x96xf32> to vector<4x96xf32>
    %cst_14 = arith.constant dense<0.000000e+00> : vector<4x96xf32>
    %54 = tpu.matmul %52, %2, %cst_14 {dimension_numbers = #tpu.dot_dimension_numbers<[1], [0], [0], [1], [0, 0, 1, 1], [], []>} : vector<4x32xf32>, vector<32x96xf32>, vector<4x96xf32> -> vector<4x96xf32>
    %55 = vector.extract_strided_slice %53 {offsets = [0, 0], sizes = [4, 32], strides = [1, 1]} : vector<4x96xf32> to vector<4x32xf32>
    %56 = vector.extract_strided_slice %54 {offsets = [0, 0], sizes = [4, 32], strides = [1, 1]} : vector<4x96xf32> to vector<4x32xf32>
    %57 = arith.addf %55, %56 : vector<4x32xf32>
    %58 = vector.broadcast %5 : vector<1x32xf32> to vector<4x32xf32>
    %59 = arith.addf %57, %58 : vector<4x32xf32>
    %60 = arith.negf %59 : vector<4x32xf32>
    %61 = math.exp %60 : vector<4x32xf32>
    %cst_15 = arith.constant 1.000000e+00 : f32
    %62 = vector.broadcast %cst_15 : f32 to vector<4x32xf32>
    %63 = arith.addf %62, %61 : vector<4x32xf32>
    %64 = arith.divf %62, %63 : vector<4x32xf32>
    %65 = vector.extract_strided_slice %53 {offsets = [0, 32], sizes = [4, 32], strides = [1, 1]} : vector<4x96xf32> to vector<4x32xf32>
    %66 = vector.extract_strided_slice %54 {offsets = [0, 32], sizes = [4, 32], strides = [1, 1]} : vector<4x96xf32> to vector<4x32xf32>
    %67 = arith.addf %65, %66 : vector<4x32xf32>
    %68 = vector.broadcast %6 : vector<1x32xf32> to vector<4x32xf32>
    %69 = arith.addf %67, %68 : vector<4x32xf32>
    %70 = arith.negf %69 : vector<4x32xf32>
    %71 = math.exp %70 : vector<4x32xf32>
    %cst_16 = arith.constant 1.000000e+00 : f32
    %72 = vector.broadcast %cst_16 : f32 to vector<4x32xf32>
    %73 = arith.addf %72, %71 : vector<4x32xf32>
    %74 = arith.divf %72, %73 : vector<4x32xf32>
    %75 = vector.extract_strided_slice %53 {offsets = [0, 64], sizes = [4, 32], strides = [1, 1]} : vector<4x96xf32> to vector<4x32xf32>
    %76 = vector.broadcast %7 : vector<1x32xf32> to vector<4x32xf32>
    %77 = arith.addf %75, %76 : vector<4x32xf32>
    %78 = vector.extract_strided_slice %54 {offsets = [0, 64], sizes = [4, 32], strides = [1, 1]} : vector<4x96xf32> to vector<4x32xf32>
    %79 = vector.broadcast %8 : vector<1x32xf32> to vector<4x32xf32>
    %80 = arith.addf %78, %79 : vector<4x32xf32>
    %81 = arith.mulf %64, %80 : vector<4x32xf32>
    %82 = arith.addf %77, %81 : vector<4x32xf32>
    %83 = math.tanh %82 : vector<4x32xf32>
    %cst_17 = arith.constant 1.000000e+00 : f32
    %84 = vector.broadcast %cst_17 : f32 to vector<4x32xf32>
    %85 = arith.subf %84, %74 : vector<4x32xf32>
    %86 = arith.mulf %85, %83 : vector<4x32xf32>
    %87 = arith.mulf %74, %52 : vector<4x32xf32>
    %88 = arith.addf %86, %87 : vector<4x32xf32>
    %89 = vector.extract_strided_slice %15 {offsets = [8, 0], sizes = [4, 96], strides = [1, 1]} : vector<20x96xf32> to vector<4x96xf32>
    %cst_18 = arith.constant dense<0.000000e+00> : vector<4x96xf32>
    %90 = tpu.matmul %88, %2, %cst_18 {dimension_numbers = #tpu.dot_dimension_numbers<[1], [0], [0], [1], [0, 0, 1, 1], [], []>} : vector<4x32xf32>, vector<32x96xf32>, vector<4x96xf32> -> vector<4x96xf32>
    %91 = vector.extract_strided_slice %89 {offsets = [0, 0], sizes = [4, 32], strides = [1, 1]} : vector<4x96xf32> to vector<4x32xf32>
    %92 = vector.extract_strided_slice %90 {offsets = [0, 0], sizes = [4, 32], strides = [1, 1]} : vector<4x96xf32> to vector<4x32xf32>
    %93 = arith.addf %91, %92 : vector<4x32xf32>
    %94 = vector.broadcast %5 : vector<1x32xf32> to vector<4x32xf32>
    %95 = arith.addf %93, %94 : vector<4x32xf32>
    %96 = arith.negf %95 : vector<4x32xf32>
    %97 = math.exp %96 : vector<4x32xf32>
    %cst_19 = arith.constant 1.000000e+00 : f32
    %98 = vector.broadcast %cst_19 : f32 to vector<4x32xf32>
    %99 = arith.addf %98, %97 : vector<4x32xf32>
    %100 = arith.divf %98, %99 : vector<4x32xf32>
    %101 = vector.extract_strided_slice %89 {offsets = [0, 32], sizes = [4, 32], strides = [1, 1]} : vector<4x96xf32> to vector<4x32xf32>
    %102 = vector.extract_strided_slice %90 {offsets = [0, 32], sizes = [4, 32], strides = [1, 1]} : vector<4x96xf32> to vector<4x32xf32>
    %103 = arith.addf %101, %102 : vector<4x32xf32>
    %104 = vector.broadcast %6 : vector<1x32xf32> to vector<4x32xf32>
    %105 = arith.addf %103, %104 : vector<4x32xf32>
    %106 = arith.negf %105 : vector<4x32xf32>
    %107 = math.exp %106 : vector<4x32xf32>
    %cst_20 = arith.constant 1.000000e+00 : f32
    %108 = vector.broadcast %cst_20 : f32 to vector<4x32xf32>
    %109 = arith.addf %108, %107 : vector<4x32xf32>
    %110 = arith.divf %108, %109 : vector<4x32xf32>
    %111 = vector.extract_strided_slice %89 {offsets = [0, 64], sizes = [4, 32], strides = [1, 1]} : vector<4x96xf32> to vector<4x32xf32>
    %112 = vector.broadcast %7 : vector<1x32xf32> to vector<4x32xf32>
    %113 = arith.addf %111, %112 : vector<4x32xf32>
    %114 = vector.extract_strided_slice %90 {offsets = [0, 64], sizes = [4, 32], strides = [1, 1]} : vector<4x96xf32> to vector<4x32xf32>
    %115 = vector.broadcast %8 : vector<1x32xf32> to vector<4x32xf32>
    %116 = arith.addf %114, %115 : vector<4x32xf32>
    %117 = arith.mulf %100, %116 : vector<4x32xf32>
    %118 = arith.addf %113, %117 : vector<4x32xf32>
    %119 = math.tanh %118 : vector<4x32xf32>
    %cst_21 = arith.constant 1.000000e+00 : f32
    %120 = vector.broadcast %cst_21 : f32 to vector<4x32xf32>
    %121 = arith.subf %120, %110 : vector<4x32xf32>
    %122 = arith.mulf %121, %119 : vector<4x32xf32>
    %123 = arith.mulf %110, %88 : vector<4x32xf32>
    %124 = arith.addf %122, %123 : vector<4x32xf32>
    %125 = vector.extract_strided_slice %15 {offsets = [12, 0], sizes = [4, 96], strides = [1, 1]} : vector<20x96xf32> to vector<4x96xf32>
    %cst_22 = arith.constant dense<0.000000e+00> : vector<4x96xf32>
    %126 = tpu.matmul %124, %2, %cst_22 {dimension_numbers = #tpu.dot_dimension_numbers<[1], [0], [0], [1], [0, 0, 1, 1], [], []>} : vector<4x32xf32>, vector<32x96xf32>, vector<4x96xf32> -> vector<4x96xf32>
    %127 = vector.extract_strided_slice %125 {offsets = [0, 0], sizes = [4, 32], strides = [1, 1]} : vector<4x96xf32> to vector<4x32xf32>
    %128 = vector.extract_strided_slice %126 {offsets = [0, 0], sizes = [4, 32], strides = [1, 1]} : vector<4x96xf32> to vector<4x32xf32>
    %129 = arith.addf %127, %128 : vector<4x32xf32>
    %130 = vector.broadcast %5 : vector<1x32xf32> to vector<4x32xf32>
    %131 = arith.addf %129, %130 : vector<4x32xf32>
    %132 = arith.negf %131 : vector<4x32xf32>
    %133 = math.exp %132 : vector<4x32xf32>
    %cst_23 = arith.constant 1.000000e+00 : f32
    %134 = vector.broadcast %cst_23 : f32 to vector<4x32xf32>
    %135 = arith.addf %134, %133 : vector<4x32xf32>
    %136 = arith.divf %134, %135 : vector<4x32xf32>
    %137 = vector.extract_strided_slice %125 {offsets = [0, 32], sizes = [4, 32], strides = [1, 1]} : vector<4x96xf32> to vector<4x32xf32>
    %138 = vector.extract_strided_slice %126 {offsets = [0, 32], sizes = [4, 32], strides = [1, 1]} : vector<4x96xf32> to vector<4x32xf32>
    %139 = arith.addf %137, %138 : vector<4x32xf32>
    %140 = vector.broadcast %6 : vector<1x32xf32> to vector<4x32xf32>
    %141 = arith.addf %139, %140 : vector<4x32xf32>
    %142 = arith.negf %141 : vector<4x32xf32>
    %143 = math.exp %142 : vector<4x32xf32>
    %cst_24 = arith.constant 1.000000e+00 : f32
    %144 = vector.broadcast %cst_24 : f32 to vector<4x32xf32>
    %145 = arith.addf %144, %143 : vector<4x32xf32>
    %146 = arith.divf %144, %145 : vector<4x32xf32>
    %147 = vector.extract_strided_slice %125 {offsets = [0, 64], sizes = [4, 32], strides = [1, 1]} : vector<4x96xf32> to vector<4x32xf32>
    %148 = vector.broadcast %7 : vector<1x32xf32> to vector<4x32xf32>
    %149 = arith.addf %147, %148 : vector<4x32xf32>
    %150 = vector.extract_strided_slice %126 {offsets = [0, 64], sizes = [4, 32], strides = [1, 1]} : vector<4x96xf32> to vector<4x32xf32>
    %151 = vector.broadcast %8 : vector<1x32xf32> to vector<4x32xf32>
    %152 = arith.addf %150, %151 : vector<4x32xf32>
    %153 = arith.mulf %136, %152 : vector<4x32xf32>
    %154 = arith.addf %149, %153 : vector<4x32xf32>
    %155 = math.tanh %154 : vector<4x32xf32>
    %cst_25 = arith.constant 1.000000e+00 : f32
    %156 = vector.broadcast %cst_25 : f32 to vector<4x32xf32>
    %157 = arith.subf %156, %146 : vector<4x32xf32>
    %158 = arith.mulf %157, %155 : vector<4x32xf32>
    %159 = arith.mulf %146, %124 : vector<4x32xf32>
    %160 = arith.addf %158, %159 : vector<4x32xf32>
    %161 = vector.extract_strided_slice %15 {offsets = [16, 0], sizes = [4, 96], strides = [1, 1]} : vector<20x96xf32> to vector<4x96xf32>
    %cst_26 = arith.constant dense<0.000000e+00> : vector<4x96xf32>
    %162 = tpu.matmul %160, %2, %cst_26 {dimension_numbers = #tpu.dot_dimension_numbers<[1], [0], [0], [1], [0, 0, 1, 1], [], []>} : vector<4x32xf32>, vector<32x96xf32>, vector<4x96xf32> -> vector<4x96xf32>
    %163 = vector.extract_strided_slice %161 {offsets = [0, 0], sizes = [4, 32], strides = [1, 1]} : vector<4x96xf32> to vector<4x32xf32>
    %164 = vector.extract_strided_slice %162 {offsets = [0, 0], sizes = [4, 32], strides = [1, 1]} : vector<4x96xf32> to vector<4x32xf32>
    %165 = arith.addf %163, %164 : vector<4x32xf32>
    %166 = vector.broadcast %5 : vector<1x32xf32> to vector<4x32xf32>
    %167 = arith.addf %165, %166 : vector<4x32xf32>
    %168 = arith.negf %167 : vector<4x32xf32>
    %169 = math.exp %168 : vector<4x32xf32>
    %cst_27 = arith.constant 1.000000e+00 : f32
    %170 = vector.broadcast %cst_27 : f32 to vector<4x32xf32>
    %171 = arith.addf %170, %169 : vector<4x32xf32>
    %172 = arith.divf %170, %171 : vector<4x32xf32>
    %173 = vector.extract_strided_slice %161 {offsets = [0, 32], sizes = [4, 32], strides = [1, 1]} : vector<4x96xf32> to vector<4x32xf32>
    %174 = vector.extract_strided_slice %162 {offsets = [0, 32], sizes = [4, 32], strides = [1, 1]} : vector<4x96xf32> to vector<4x32xf32>
    %175 = arith.addf %173, %174 : vector<4x32xf32>
    %176 = vector.broadcast %6 : vector<1x32xf32> to vector<4x32xf32>
    %177 = arith.addf %175, %176 : vector<4x32xf32>
    %178 = arith.negf %177 : vector<4x32xf32>
    %179 = math.exp %178 : vector<4x32xf32>
    %cst_28 = arith.constant 1.000000e+00 : f32
    %180 = vector.broadcast %cst_28 : f32 to vector<4x32xf32>
    %181 = arith.addf %180, %179 : vector<4x32xf32>
    %182 = arith.divf %180, %181 : vector<4x32xf32>
    %183 = vector.extract_strided_slice %161 {offsets = [0, 64], sizes = [4, 32], strides = [1, 1]} : vector<4x96xf32> to vector<4x32xf32>
    %184 = vector.broadcast %7 : vector<1x32xf32> to vector<4x32xf32>
    %185 = arith.addf %183, %184 : vector<4x32xf32>
    %186 = vector.extract_strided_slice %162 {offsets = [0, 64], sizes = [4, 32], strides = [1, 1]} : vector<4x96xf32> to vector<4x32xf32>
    %187 = vector.broadcast %8 : vector<1x32xf32> to vector<4x32xf32>
    %188 = arith.addf %186, %187 : vector<4x32xf32>
    %189 = arith.mulf %172, %188 : vector<4x32xf32>
    %190 = arith.addf %185, %189 : vector<4x32xf32>
    %191 = math.tanh %190 : vector<4x32xf32>
    %cst_29 = arith.constant 1.000000e+00 : f32
    %192 = vector.broadcast %cst_29 : f32 to vector<4x32xf32>
    %193 = arith.subf %192, %182 : vector<4x32xf32>
    %194 = arith.mulf %193, %191 : vector<4x32xf32>
    %195 = arith.mulf %182, %160 : vector<4x32xf32>
    %196 = arith.addf %194, %195 : vector<4x32xf32>
    %cst_30 = arith.constant dense<0.000000e+00> : vector<4xf32>
    %197 = vector.multi_reduction <add>, %196, %cst_30 [1] : vector<4x32xf32> to vector<4xf32>
    %198 = vector.shape_cast %197 : vector<4xf32> to vector<4x1xf32>
    %cst_31 = arith.constant 3.200000e+01 : f32
    %199 = vector.broadcast %cst_31 : f32 to vector<4x1xf32>
    %200 = arith.divf %198, %199 : vector<4x1xf32>
    %201 = vector.broadcast %200 : vector<4x1xf32> to vector<4x32xf32>
    %202 = arith.subf %196, %201 : vector<4x32xf32>
    %203 = arith.mulf %202, %202 : vector<4x32xf32>
    %cst_32 = arith.constant dense<0.000000e+00> : vector<4xf32>
    %204 = vector.multi_reduction <add>, %203, %cst_32 [1] : vector<4x32xf32> to vector<4xf32>
    %205 = vector.shape_cast %204 : vector<4xf32> to vector<4x1xf32>
    %cst_33 = arith.constant 3.200000e+01 : f32
    %206 = vector.broadcast %cst_33 : f32 to vector<4x1xf32>
    %207 = arith.divf %205, %206 : vector<4x1xf32>
    %208 = vector.broadcast %200 : vector<4x1xf32> to vector<4x32xf32>
    %209 = arith.subf %196, %208 : vector<4x32xf32>
    %cst_34 = arith.constant 9.99999974E-6 : f32
    %210 = vector.broadcast %cst_34 : f32 to vector<4x1xf32>
    %211 = arith.addf %207, %210 : vector<4x1xf32>
    %212 = math.rsqrt %211 : vector<4x1xf32>
    %213 = vector.broadcast %212 : vector<4x1xf32> to vector<4x32xf32>
    %214 = arith.mulf %209, %213 : vector<4x32xf32>
    %215 = vector.broadcast %9 : vector<1x32xf32> to vector<4x32xf32>
    %216 = arith.mulf %214, %215 : vector<4x32xf32>
    %217 = vector.broadcast %10 : vector<1x32xf32> to vector<4x32xf32>
    %218 = arith.addf %216, %217 : vector<4x32xf32>
    %cst_35 = arith.constant dense<0.000000e+00> : vector<4x32xf32>
    %219 = tpu.matmul %218, %11, %cst_35 {dimension_numbers = #tpu.dot_dimension_numbers<[1], [0], [0], [1], [0, 0, 1, 1], [], []>} : vector<4x32xf32>, vector<32x32xf32>, vector<4x32xf32> -> vector<4x32xf32>
    %220 = vector.broadcast %13 : vector<1x32xf32> to vector<4x32xf32>
    %221 = arith.addf %219, %220 : vector<4x32xf32>
    %cst_36 = arith.constant 5.000000e-01 : f32
    %222 = vector.broadcast %cst_36 : f32 to vector<4x32xf32>
    %223 = arith.mulf %222, %221 : vector<4x32xf32>
    %cst_37 = arith.constant 0.707106769 : f32
    %224 = vector.broadcast %cst_37 : f32 to vector<4x32xf32>
    %225 = arith.mulf %221, %224 : vector<4x32xf32>
    %226 = math.erf %225 : vector<4x32xf32>
    %cst_38 = arith.constant 1.000000e+00 : f32
    %227 = vector.broadcast %cst_38 : f32 to vector<4x32xf32>
    %228 = arith.addf %227, %226 : vector<4x32xf32>
    %229 = arith.mulf %223, %228 : vector<4x32xf32>
    %cst_39 = arith.constant dense<0.000000e+00> : vector<4x32xf32>
    %230 = tpu.matmul %229, %12, %cst_39 {dimension_numbers = #tpu.dot_dimension_numbers<[1], [0], [0], [1], [0, 0, 1, 1], [], []>} : vector<4x32xf32>, vector<32x32xf32>, vector<4x32xf32> -> vector<4x32xf32>
    %231 = vector.broadcast %14 : vector<1x32xf32> to vector<4x32xf32>
    %232 = arith.addf %230, %231 : vector<4x32xf32>
    %233 = vector.extract_strided_slice %232 {offsets = [0, 0], sizes = [4, 2], strides = [1, 1]} : vector<4x32xf32> to vector<4x2xf32>
    %c0_40 = arith.constant 0 : index
    %c0_41 = arith.constant 0 : index
    %234 = vector.load %arg5[%c0_40, %c0_41] : memref<4x2xf32, #tpu.memory_space<vmem>>, vector<4x2xf32>
    tpu.vector_store %arg5[%c0_40, %c0_41], %233 {strides = array<i32>} : memref<4x2xf32, #tpu.memory_space<vmem>>, vector<4x2xf32>,
    return
  }
}

</mosaic_0001>

<bundles_post_ra>
// kernel: tpu_custom_call.1
= control target key start
LH: loop header
LB: loop body
LE: loop exit
PB: predicated region body
PF: predicated region fallthrough
CT: control target
= control target key end

     0   :  { %v1180_v0 = vmov 0.0|0.0   ;;  %v1181_v4 = vmov 0.0   ;;  %vm38_vm0 = vcmask 64512   ;;  %v203_v5 = vlaneseq  ;;  %s1185_s9 = smov 96   ;;  %s1418_s2 = inlined_call_operand.vmem [shape: f32[32,96], index: 2, kind: input, shape index: {}]   ;;  %s1419_s1 = inlined_call_operand.vmem [shape: f32[8,96], index: 1, kind: input, shape index: {}]   ;;  %s1420_s0 = inlined_call_operand.vmem [shape: f32[20,8], index: 0, kind: input, shape index: {}]   ;;  %s1421_s3 = inlined_call_operand.vmem [shape: f32[8,32], index: 3, kind: input, shape index: {}]   ;;  %s1422_s4 = inlined_call_operand.vmem [shape: f32[72,32], index: 4, kind: input, shape index: {}]   ;;  %s1423_s5 = inlined_call_operand.vmem [shape: f32[4,2], index: 5, kind: output, shape index: {}]  }
   0x1   :  { %1078 = vmatprep.subr.bf16.mxu1 %v1180_v0  ;;  %v24_v1 = vld [vmem:[%s1418_s2] sm:$0xff]  ;;  %v25_v2 = vld [vmem:[%s1418_s2 + $0x8] sm:$0xff]  ;;  %v26_v3 = vld [vmem:[%s1418_s2 + $0x10] sm:$0xff]  ;;  %990 = vmatprep.subr.mxu0 %v1181_v4  ;;  %vm1182_vm1 = vmmov 0   ;;  %vm128_vm2 = vcmask 261120   ;;  %vm728_vm3 = vcmask 257024  }
   0x2   :  { %v1227_v6 = vpack.c.bf16 %v25_v2, %v24_v1  ;;  %v27_v7 = vld [vmem:[%s1418_s2 + $0x18] sm:$0xff]  ;;  %v23_v8 = vld [vmem:[%s1419_s1] sm:$0xff]  ;;  %992 = vmatprep.mubr.msk.f32.mxu0 %vm1182_vm1, %v1181_v4  ;;  %1009 = vmatprep.mubr.msk.f32.mxu1 %vm1182_vm1, %v1181_v4  ;;  %v1242_v10 = vshrl.u32 %v203_v5, 7  ;;  %v21_v17 = vld [vmem:[%s1420_s0 + $0x8] sm:$0xff]  ;;  %vm926_vm4 = vcmask 11264  }
   0x3   :  { %v20_v9 = vld [vmem:[%s1420_s0] sm:$0xff]  ;;  %991 = vmatpush3.msra.mxu0 %v23_v8  ;;  %v1245_v11 = vpack.c.bf16 %v27_v7, %v26_v3  ;;  %v22_v18 = vld [vmem:[%s1420_s0 + $0x10] sm:$0xf]  ;;  %s1184_s0 = smov 32  }
   0x4   :  { %1080 = vmatpush3.bf16.msra.mxu1 %v1227_v6  ;;  %993 = vmatmul.mubr.msk.f32.vlgmr.msra.gmra.mrb[0].mxu0 %vm38_vm0, %v20_v9  ;;  %v1251_v12 = vld [vmem:[%s1421_s3] sm:$0xff]  ;;  %v240_v13 = vsub.s32 3, %v1242_v10  ;;  %v231_v14 = vsub.s32 2, %v1242_v10  ;;  %s1183_s3 = smov 64   ;;  %v216_v22 = vsub.s32 1, %v1242_v10  ;;  %v205_v28 = vsub.s32 0, %v1242_v10 }
   0x5   :  { %1081 = vmatprep.subr.bf16.mxu1 %v1180_v0  ;;  %995 = vmatprep.mubr.msk.f32.mxu0 %vm1182_vm1, %v1181_v4 }
   0x6   :  { %1084 = vmatprep.subr.bf16.mxu0 %v1180_v0  ;;  %v241_v15 = vrot.slane %v1251_v12, %v240_v13  ;;  %v232_v16 = vrot.slane %v1251_v12, %v231_v14  ;;  %v217_v27 = vrot.slane %v1251_v12, %v216_v22  ;;  %v1301_v29 = vrot.slane %v1251_v12, %v205_v28 }
   0x7   :  { %1086 = vmatpush3.bf16.msra.mxu0 %v1227_v6 }
   0x8   :  { %1083 = vmatpush3.bf16.msra.mxu1 %v1245_v11  ;;  %1087 = vmatprep.subr.bf16.mxu0 %v1180_v0 }
   0x9   :  { %243 = vrot.lane.b32.xlu0 %v241_v15, %s1183_s3  ;;  %234 = vrot.lane.b32.xlu1 %v232_v16, %s1183_s3 }
   0xa   :  { %1090 = vmatprep.subr.bf16.mxu1 %v1180_v0  ;;  %996 = vmatmul.mubr.msk.f32.gmra.mrb[2].mxu0 %vm38_vm0, %v21_v17 }
   0xb   :  { %1010 = vmatmul.mubr.f32.vlgmr.msra.gmra.mrb[0].mxu1 %v1181_v4  ;;  %1089 = vmatpush3.bf16.msra.mxu0 %v1245_v11 }
   0xc   :  { %1092 = vmatpush3.bf16.msra.mxu1 %v1227_v6  ;;  %1031 = vmatprep.mubr.msk.f32.mxu1 %vm1182_vm1, %v1181_v4 }
   0xd   :  { %1093 = vmatprep.subr.bf16.mxu1 %v1180_v0  ;;  %1096 = vmatprep.subr.bf16.mxu0 %v1180_v0 }
   0xe   :  { %998 = vmatprep.mubr.msk.f32.mxu0 %vm1182_vm1, %v1181_v4 }
   0xf   :  { %999 = vmatmul.mubr.msk.f32.gmra.mrb[4].mxu0 %vm38_vm0, %v22_v18 }
  0x10   :  { %1095 = vmatpush3.bf16.msra.mxu1 %v1245_v11  ;;  %1020 = vmatprep.mubr.msk.f32.mxu0 %vm1182_vm1, %v1181_v4 }
  0x11   :  { %1102 = vmatprep.subr.bf16.mxu1 %v1180_v0 }
  0x7b   :  { %v1288_v21 = vpop.permute.xlu0 %243  ;;  %v1309_v41 = vpop.permute.xlu1 %234 }
  0xd7   :  { %v114_v19 = vpop.f32.mrb[0].mxu0 }
  0xd8   :  { %v994_v20 = vpop.f32.mrb[1].mxu0  ;;  %v237_v42 = vadd.f32 %v1309_v41, %v114_v19 }
  0xdd   :  { %v1304_v32 = vpop.f32.mrb[2].mxu0 }
  0xde   :  { %v198_v23 = vpop.f32.mrb[0].mxu1  ;;  %v997_v33 = vpop.f32.mrb[3].mxu0 }
  0xdf   :  { %v202_v24 = vadd.f32 %v198_v23, %v114_v19  ;;  %v246_v25 = vadd.f32 %v1288_v21, %v198_v23  ;;  %v1011_v26 = vpop.f32.mrb[1].mxu1 }
  0xe1   :  { %248 = vrot.lane.b32.xlu0 %v246_v25, %s1183_s3  ;;  %v207_v30 = vadd.f32 %v1301_v29, %v202_v24 }
  0xe2   :  { %v1306_v35 = vpop.f32.mrb[4].mxu0 }
  0xe3   :  { %v935_v31 = vmul.f32 -1.442695, %v207_v30  ;;  %v1000_v37 = vpop.f32.mrb[5].mxu0 }
  0xe5   :  { %219 = vrot.lane.b32.xlu0 %v217_v27, %s1184_s0  ;;  %1126 = vpow2.f32 %v935_v31 }
  0xef   :  { %v1127_v34 = vpop.eup %1126 }
  0xf0   :  { %v211_v36 = vadd.f32 1.0, %v1127_v34 }
  0xf2   :  { %1128 = vrcp.f32 %v211_v36 }
  0xfc   :  { %v1129_v38 = vpop.eup %1128 }
 0x153   :  { %v249_v39 = vpop.permute.xlu0 %248 }
 0x154   :  { %v251_v40 = vmul.f32 %v1129_v38, %v249_v39 }
 0x156   :  { %253 = vrot.lane.b32.xlu1 %v251_v40, %s1183_s3 }
 0x157   :  { %v1313_v46 = vpop.permute.xlu0 %219 }
 0x158   :  { %v222_v47 = vadd.f32 %v1313_v46, %v202_v24 }
 0x15a   :  { %v936_v48 = vmul.f32 -1.442695, %v222_v47 }
 0x1c8   :  { %v254_v43 = vpop.permute.xlu1 %253 }
 0x1c9   :  { %v256_v44 = vadd.f32 %v254_v43, %v237_v42 }
 0x1cb   :  { %1130 = vtanh.f32 %v256_v44 }
 0x1cc   :  { %1132 = vpow2.f32 %v936_v48 }
 0x1d5   :  { %v1131_v45 = vpop.eup %1130 }
 0x1d6   :  { %260 = vrot.lane.b32.xlu1 %v1131_v45, %s1185_s9  ;;  %v1133_v49 = vpop.eup %1132  ;;  %v473_v45 = vadd.f32 %v1309_v41, %v1304_v32 }
 0x1d7   :  { %v226_v50 = vadd.f32 1.0, %v1133_v49 }
 0x1d9   :  { %1134 = vrcp.f32 %v226_v50 }
 0x1e3   :  { %v1135_v51 = vpop.eup %1134 }
 0x1e4   :  { %v258_v52 = vsub.f32 1.0, %v1135_v51  ;;  %v264_v54 = vmul.f32 0.0, %v1135_v51 }
 0x248   :  { %v261_v53 = vpop.permute.xlu1 %260 }
 0x249   :  { %v263_v55 = vmul.f32 %v261_v53, %v258_v52 }
 0x24b   :  { %v265_v56 = vadd.f32 %v264_v54, %v263_v55 }
 0x24d   :  { %267 = vrot.lane.b32.xlu0 %v265_v56, %s1185_s9  ;;  %v378_v7 = vrot.slane %v265_v56, 4 }
 0x2bf   :  { %v268_v57 = vpop.permute.xlu0 %267 }
 0x2c0   :  { %1021 = vmatmul.mubr.msk.f32.vlgmr.msra.gmra.mrb[6].mxu0 %vm128_vm2, %v268_v57 }
 0x2c1   :  { %1098 = vmatpush3.bf16.msra.mxu0 %v1227_v6  ;;  %1042 = vmatprep.mubr.msk.f32.mxu0 %vm1182_vm1, %v1181_v4 }
 0x2c2   :  { %1099 = vmatprep.subr.bf16.mxu0 %v1180_v0 }
 0x2c5   :  { %1101 = vmatpush3.bf16.msra.mxu0 %v1245_v11 }
 0x2c6   :  { %1108 = vmatprep.subr.bf16.mxu0 %v1180_v0 }
 0x393   :  { %v337_v58 = vpop.f32.mrb[6].mxu0 }
 0x394   :  { %v342_v59 = vrot.slane %v337_v58, 4  ;;  %v359_v60 = vadd.f32 %v337_v58, %v1288_v21  ;;  %v1022_v61 = vpop.f32.mrb[7].mxu0 }
 0x396   :  { %v344_v62 = vadd.f32 %v342_v59, %v114_v19  ;;  %v361_v63 = vrot.slane %v359_v60, 4 }
 0x398   :  { %v352_v1 = vadd.f32 %v344_v62, %v1313_v46  ;;  %362 = vrot.lane.b32.xlu1 %v361_v63, %s1183_s3  ;;  %v345_v13 = vadd.f32 %v344_v62, %v1301_v29 }
 0x39a   :  { %v939_v2 = vmul.f32 -1.442695, %v352_v1  ;;  %v938_v14 = vmul.f32 -1.442695, %v345_v13 }
 0x39c   :  { %1136 = vpow2.f32 %v939_v2 }
 0x3a6   :  { %v1137_v3 = vpop.eup %1136 }
 0x3a7   :  { %v356_v5 = vadd.f32 1.0, %v1137_v3 }
 0x3a9   :  { %1138 = vrcp.f32 %v356_v5 }
 0x3aa   :  { %1140 = vpow2.f32 %v938_v14 }
 0x3b3   :  { %v1139_v8 = vpop.eup %1138 }
 0x3b4   :  { %v380_v9 = vmul.f32 %v1139_v8, %v378_v7  ;;  %v1141_v15 = vpop.eup %1140  ;;  %v372_v25 = vsub.f32 1.0, %v1139_v8 }
 0x3b5   :  { %v349_v16 = vadd.f32 1.0, %v1141_v15 }
 0x3b7   :  { %1142 = vrcp.f32 %v349_v16 }
 0x3c1   :  { %v1143_v17 = vpop.eup %1142 }
 0x40a   :  { %v363_v18 = vpop.permute.xlu1 %362 }
 0x40b   :  { %v365_v19 = vmul.f32 %v1143_v17, %v363_v18 }
 0x40d   :  { %367 = vrot.lane.b32.xlu0 %v365_v19, %s1183_s3 }
 0x47f   :  { %v368_v20 = vpop.permute.xlu0 %367 }
 0x480   :  { %v370_v23 = vadd.f32 %v368_v20, %v237_v42 }
 0x482   :  { %1144 = vtanh.f32 %v370_v23 }
 0x48c   :  { %v1145_v24 = vpop.eup %1144 }
 0x48d   :  { %374 = vrot.lane.b32.xlu1 %v1145_v24, %s1185_s9 }
 0x4ff   :  { %v375_v26 = vpop.permute.xlu1 %374 }
 0x500   :  { %v377_v27 = vmul.f32 %v375_v26, %v372_v25 }
 0x502   :  { %v381_v30 = vadd.f32 %v380_v9, %v377_v27 }
 0x504   :  { %v383_v31 = vrot.slane %v381_v30, 4 }
 0x506   :  { %384 = vrot.lane.b32.xlu0 %v383_v31, %s1185_s9 }
 0x578   :  { %v385_v33 = vpop.permute.xlu0 %384 }
 0x579   :  { %1032 = vmatmul.mubr.msk.f32.vlgmr.msra.gmra.mrb[2].mxu1 %vm128_vm2, %v385_v33 }
 0x57a   :  { %1104 = vmatpush3.bf16.msra.mxu1 %v1227_v6  ;;  %1053 = vmatprep.mubr.msk.f32.mxu1 %vm1182_vm1, %v1181_v4 }
 0x57b   :  { %1105 = vmatprep.subr.bf16.mxu1 %v1180_v0 }
 0x57e   :  { %1107 = vmatpush3.bf16.msra.mxu1 %v1245_v11 }
 0x57f   :  { %1114 = vmatprep.subr.bf16.mxu1 %v1180_v0 }
 0x64c   :  { %v454_v34 = vpop.f32.mrb[2].mxu1 }
 0x64d   :  { %v458_v36 = vadd.f32 %v454_v34, %v1304_v32  ;;  %v474_v37 = vadd.f32 %v454_v34, %v1288_v21  ;;  %v1033_v38 = vpop.f32.mrb[3].mxu1 }
 0x64f   :  { %476 = vrot.lane.b32.xlu1 %v474_v37, %s1183_s3  ;;  %v459_v39 = vadd.f32 %v458_v36, %v1301_v29  ;;  %v466_v50 = vadd.f32 %v458_v36, %v1313_v46 }
 0x651   :  { %v941_v6 = vmul.f32 -1.442695, %v459_v39  ;;  %v942_v51 = vmul.f32 -1.442695, %v466_v50 }
 0x653   :  { %1146 = vpow2.f32 %v941_v6 }
 0x65d   :  { %v1147_v40 = vpop.eup %1146 }
 0x65e   :  { %v463_v42 = vadd.f32 1.0, %v1147_v40 }
 0x660   :  { %1148 = vrcp.f32 %v463_v42 }
 0x66a   :  { %v1149_v43 = vpop.eup %1148 }
 0x6c1   :  { %v477_v44 = vpop.permute.xlu1 %476 }
 0x6c2   :  { %v479_v11 = vmul.f32 %v1149_v43, %v477_v44 }
 0x6c4   :  { %481 = vrot.lane.b32.xlu0 %v479_v11, %s1183_s3 }
 0x736   :  { %v482_v47 = vpop.permute.xlu0 %481 }
 0x737   :  { %v484_v48 = vadd.f32 %v482_v47, %v473_v45 }
 0x739   :  { %1150 = vtanh.f32 %v484_v48 }
 0x73a   :  { %1152 = vpow2.f32 %v942_v51 }
 0x743   :  { %v1151_v49 = vpop.eup %1150 }
 0x744   :  { %488 = vrot.lane.b32.xlu1 %v1151_v49, %s1185_s9  ;;  %v1153_v52 = vpop.eup %1152 }
 0x745   :  { %v470_v53 = vadd.f32 1.0, %v1153_v52 }
 0x747   :  { %1154 = vrcp.f32 %v470_v53 }
 0x751   :  { %v1155_v54 = vpop.eup %1154 }
 0x752   :  { %v486_v55 = vsub.f32 1.0, %v1155_v54  ;;  %v493_v57 = vmul.f32 %v1155_v54, %v383_v31 }
 0x7b6   :  { %v489_v56 = vpop.permute.xlu1 %488 }
 0x7b7   :  { %v491_v58 = vmul.f32 %v489_v56, %v486_v55 }
 0x7b9   :  { %v494_v59 = vadd.f32 %v493_v57, %v491_v58 }
 0x7bb   :  { %496 = vrot.lane.b32.xlu0 %v494_v59, %s1185_s9  ;;  %v607_v13 = vrot.slane %v494_v59, 4  ;;  %v749_v59 = vsub.s32 4, %v1242_v10 }
 0x82d   :  { %v497_v60 = vpop.permute.xlu0 %496 }
 0x82e   :  { %1043 = vmatmul.mubr.msk.f32.vlgmr.msra.gmra.mrb[8].mxu0 %vm128_vm2, %v497_v60 }
 0x82f   :  { %1064 = vmatprep.mubr.msk.f32.mxu0 %vm1182_vm1, %v1181_v4 }
 0x901   :  { %v566_v61 = vpop.f32.mrb[8].mxu0 }
 0x902   :  { %v571_v62 = vrot.slane %v566_v61, 4  ;;  %v588_v63 = vadd.f32 %v566_v61, %v1288_v21  ;;  %v1044_v1 = vpop.f32.mrb[9].mxu0 }
 0x904   :  { %v573_v2 = vadd.f32 %v571_v62, %v1304_v32  ;;  %v590_v3 = vrot.slane %v588_v63, 4 }
 0x906   :  { %v581_v5 = vadd.f32 %v573_v2, %v1313_v46  ;;  %591 = vrot.lane.b32.xlu1 %v590_v3, %s1183_s3  ;;  %v574_v16 = vadd.f32 %v573_v2, %v1301_v29  ;;  %v758_v3 = vsub.s32 5, %v1242_v10 }
 0x908   :  { %v945_v7 = vmul.f32 -1.442695, %v581_v5  ;;  %v944_v17 = vmul.f32 -1.442695, %v574_v16  ;;  %v759_v5 = vrot.slane %v1251_v12, %v758_v3 }
 0x90a   :  { %1156 = vpow2.f32 %v945_v7  ;;  %v29_v7 = vld [vmem:[%s1422_s4] sm:$0xff] }
 0x914   :  { %v1157_v8 = vpop.eup %1156 }
 0x915   :  { %v585_v9 = vadd.f32 1.0, %v1157_v8  ;;  %v30_v8 = vld [vmem:[%s1422_s4 + $0x8] sm:$0xff] }
 0x917   :  { %1158 = vrcp.f32 %v585_v9  ;;  %v31_v9 = vld [vmem:[%s1422_s4 + $0x10] sm:$0xff] }
 0x918   :  { %1160 = vpow2.f32 %v944_v17 }
 0x921   :  { %v1159_v14 = vpop.eup %1158 }
 0x922   :  { %v609_v15 = vmul.f32 %v1159_v14, %v607_v13  ;;  %v1161_v18 = vpop.eup %1160  ;;  %v601_v27 = vsub.f32 1.0, %v1159_v14  ;;  %v1109_v13 = vpack.c.bf16 %v30_v8, %v29_v7  ;;  %v32_v14 = vld [vmem:[%s1422_s4 + $0x18] sm:$0xff] }
 0x923   :  { %v578_v19 = vadd.f32 1.0, %v1161_v18 }
 0x924   :  { %1110 = vmatpush3.bf16.msra.mxu0 %v1109_v13 }
 0x925   :  { %1162 = vrcp.f32 %v578_v19  ;;  %1111 = vmatprep.subr.bf16.mxu0 %v1180_v0 }
 0x92f   :  { %v1163_v32 = vpop.eup %1162 }
 0x978   :  { %v592_v20 = vpop.permute.xlu1 %591 }
 0x979   :  { %v594_v23 = vmul.f32 %v1163_v32, %v592_v20 }
 0x97b   :  { %596 = vrot.lane.b32.xlu0 %v594_v23, %s1183_s3 }
 0x9ed   :  { %v597_v24 = vpop.permute.xlu0 %596 }
 0x9ee   :  { %v599_v25 = vadd.f32 %v597_v24, %v473_v45 }
 0x9f0   :  { %1164 = vtanh.f32 %v599_v25 }
 0x9fa   :  { %v1165_v26 = vpop.eup %1164 }
 0x9fb   :  { %603 = vrot.lane.b32.xlu1 %v1165_v26, %s1185_s9  ;;  %v33_v26 = vld [vmem:[%s1422_s4 + $0x20] sm:$0xff] }
 0xa6d   :  { %v604_v30 = vpop.permute.xlu1 %603 }
 0xa6e   :  { %v606_v31 = vmul.f32 %v604_v30, %v601_v27  ;;  %v34_v27 = vld [vmem:[%s1422_s4 + $0x28] sm:$0xff] }
 0xa6f   :  { %v1115_v30 = vpack.c.bf16 %v34_v27, %v33_v26 }
 0xa70   :  { %v610_v33 = vadd.f32 %v609_v15, %v606_v31  ;;  %v35_v31 = vld [vmem:[%s1422_s4 + $0x30] sm:$0xff] }
 0xa72   :  { %v612_v34 = vrot.slane %v610_v33, 4  ;;  %v36_v33 = vld [vmem:[%s1422_s4 + $0x38] sm:$0xff] }
 0xa74   :  { %613 = vrot.lane.b32.xlu0 %v612_v34, %s1185_s9 }
 0xae6   :  { %v614_v36 = vpop.permute.xlu0 %613 }
 0xae7   :  { %1054 = vmatmul.mubr.msk.f32.vlgmr.msra.gmra.mrb[4].mxu1 %vm128_vm2, %v614_v36  ;;  %v37_v36 = vld [vmem:[%s1422_s4 + $0x40] sm:$0xff] }
 0xae8   :  { %1075 = vmatprep.mubr.msk.f32.mxu1 %vm1182_vm1, %v1181_v4  ;;  %v702_v4 = vadd.f32 %v1309_v41, %v1306_v35  ;;  %1116 = vmatpush3.bf16.msra.mxu1 %v1115_v30 }
 0xae9   :  { %1117 = vmatprep.subr.bf16.mxu1 %v1180_v0 }
 0xbba   :  { %v683_v37 = vpop.f32.mrb[4].mxu1 }
 0xbbb   :  { %v687_v38 = vadd.f32 %v683_v37, %v1306_v35  ;;  %v703_v39 = vadd.f32 %v683_v37, %v1288_v21  ;;  %v1055_v6 = vpop.f32.mrb[5].mxu1  ;;  %v768_v37 = vrot.slane %v37_v36, %v205_v28 }
 0xbbd   :  { %705 = vrot.lane.b32.xlu1 %v703_v39, %s1183_s3  ;;  %v688_v40 = vadd.f32 %v687_v38, %v1301_v29  ;;  %v695_v29 = vadd.f32 %v687_v38, %v1313_v46  ;;  %v750_v46 = vrot.slane %v1251_v12, %v749_v59  ;;  %v1112_v12 = vpack.c.bf16 %v32_v14, %v31_v9 }
 0xbbf   :  { %v947_v42 = vmul.f32 -1.442695, %v688_v40  ;;  %v948_v50 = vmul.f32 -1.442695, %v695_v29  ;;  %1113 = vmatpush3.bf16.msra.mxu0 %v1112_v12 }
 0xbc1   :  { %1166 = vpow2.f32 %v947_v42 }
 0xbcb   :  { %v1167_v43 = vpop.eup %1166 }
 0xbcc   :  { %v692_v44 = vadd.f32 1.0, %v1167_v43 }
 0xbce   :  { %1168 = vrcp.f32 %v692_v44 }
 0xbd8   :  { %v1169_v11 = vpop.eup %1168 }
 0xc2f   :  { %v706_v45 = vpop.permute.xlu1 %705 }
 0xc30   :  { %v708_v47 = vmul.f32 %v1169_v11, %v706_v45  ;;  %v852_v11 = vrot.slane %v37_v36, %v216_v22 }
 0xc32   :  { %710 = vrot.lane.b32.xlu0 %v708_v47, %s1183_s3 }
 0xca4   :  { %v711_v48 = vpop.permute.xlu0 %710 }
 0xca5   :  { %v713_v21 = vadd.f32 %v711_v48, %v702_v4 }
 0xca7   :  { %1170 = vtanh.f32 %v713_v21 }
 0xca8   :  { %1172 = vpow2.f32 %v948_v50 }
 0xcb1   :  { %v1171_v49 = vpop.eup %1170 }
 0xcb2   :  { %717 = vrot.lane.b32.xlu1 %v1171_v49, %s1185_s9  ;;  %v1173_v51 = vpop.eup %1172 }
 0xcb3   :  { %v699_v52 = vadd.f32 1.0, %v1173_v51 }
 0xcb5   :  { %1174 = vrcp.f32 %v699_v52 }
 0xcbf   :  { %v1175_v53 = vpop.eup %1174 }
 0xcc0   :  { %v715_v54 = vsub.f32 1.0, %v1175_v53  ;;  %v722_v56 = vmul.f32 %v1175_v53, %v612_v34  ;;  %v1118_v34 = vpack.c.bf16 %v36_v33, %v35_v31 }
 0xcc2   :  { %1119 = vmatpush3.bf16.msra.mxu1 %v1118_v34 }
 0xd24   :  { %v718_v55 = vpop.permute.xlu1 %717 }
 0xd25   :  { %v720_v57 = vmul.f32 %v718_v55, %v715_v54 }
 0xd27   :  { %v723_v58 = vadd.f32 %v722_v56, %v720_v57 }
 0xd29   :  { %725 = vrot.lane.b32.xlu0 %v723_v58, %s1185_s9 }
 0xd9b   :  { %v726_v35 = vpop.permute.xlu0 %725 }
 0xd9c   :  { %v729_v41 = vsel %vm728_vm3, %v726_v35, 0.0 }
 0xd9d   :  { %730 = vadd.xlane.f32.xlu1 %v729_v41 }
 0xdae   :  { %752 = vrot.lane.b32.xlu1 %v750_v46, %s1184_s0 }
 0xe2a   :  { %v731_v60 = vpop.xlane.xlu1 %730 }
 0xe2b   :  { %v733_v61 = vmul.f32 0.03125, %v731_v60 }
 0xe2d   :  { %v734_v62 = vsub.f32 %v723_v58, %v733_v61 }
 0xe2e   :  { %v753_v19 = vpop.permute.xlu1 %752 }
 0xe2f   :  { %v735_v63 = vmul.f32 %v734_v62, %v734_v62 }
 0xe31   :  { %737 = vrot.lane.b32.xlu0 %v735_v63, %s1185_s9 }
 0xea3   :  { %v738_v1 = vpop.permute.xlu0 %737 }
 0xea4   :  { %v740_v2 = vsel %vm728_vm3, %v738_v1, 0.0 }
 0xea5   :  { %741 = vadd.xlane.f32.xlu0 %v740_v2 }
 0xebb   :  { %761 = vrot.lane.b32.xlu0 %v759_v5, %s1184_s0 }
 0xf32   :  { %v742_v15 = vpop.xlane.xlu0 %741 }
 0xf33   :  { %v743_v16 = vmul.f32 0.03125, %v742_v15 }
 0xf35   :  { %v744_v17 = vadd.f32 1e-05, %v743_v16 }
 0xf36   :  { %v762_v20 = vpop.permute.xlu0 %761 }
 0xf37   :  { %1176 = vrsqrt.f32 %v744_v17 }
 0xf41   :  { %v1177_v18 = vpop.eup %1176 }
 0xf42   :  { %v746_v32 = vmul.f32 %v1177_v18, %v734_v62 }
 0xf44   :  { %v755_v23 = vmul.f32 %v753_v19, %v746_v32 }
 0xf46   :  { %v764_v24 = vadd.f32 %v762_v20, %v755_v23 }
 0xf48   :  { %770 = vrot.lane.b32.xlu1 %v764_v24, %s1185_s9 }
 0xfba   :  { %v771_v25 = vpop.permute.xlu1 %770 }
 0xfbb   :  { %1065 = vmatmul.mubr.msk.f32.vlgmr.msra.gmra.mrb[10].mxu0 %vm128_vm2, %v771_v25 }
0x108e   :  { %v840_v38 = vpop.f32.mrb[10].mxu0 }
0x108f   :  { %v841_v39 = vadd.f32 %v840_v38, %v768_v37  ;;  %v1066_v0 = vpop.f32.mrb[11].mxu0 }
0x1091   :  { %v845_v6 = vmul.f32 0.70710677, %v841_v39  ;;  %v844_v42 = vmul.f32 0.5, %v841_v39 }
0x1093   :  { %1178 = verf.f32 %v845_v6 }
0x109d   :  { %v1179_v40 = vpop.eup %1178 }
0x109e   :  { %v847_v43 = vadd.f32 1.0, %v1179_v40 }
0x10a0   :  { %v848_v44 = vmul.f32 %v847_v43, %v844_v42 }
0x10a2   :  { %1076 = vmatmul.mubr.msk.f32.vlgmr.msra.gmra.mrb[6].mxu1 %vm128_vm2, %v848_v44 }
0x1175   :  { %v922_v45 = vpop.f32.mrb[6].mxu1 }
0x1176   :  { %v923_v47 = vadd.f32 %v922_v45, %v852_v11  ;;  %v1077_v4 = vpop.f32.mrb[7].mxu1 }
0x1178   :  { %927 = vst.msk [vmem:[%s1423_s5] sm:$0xf] %vm926_vm4, %v923_v47 }

</bundles_post_ra>
